<compile_context>
chip_gen: v5e
topology: v5e:2x2
jax: 0.10.0
libtpu: 0.0.40
codegen_flags: <defaults>
</compile_context>

<pallas_src>
import numpy as np
import jax
import jax.numpy as jnp
from jax import lax
from jax.experimental import pallas as pl
from jax.experimental.pallas import tpu as pltpu

PAD_ID = 0
NUM_PADDING_AT_BEGINNING = 0  # default in the PyTorch module
# TODO(synk): general num_padding_at_beginning>0 (n-th pad occurrence) needs a cumsum
#             scan; only the default (first pad occurrence) is implemented in-kernel.
COMPUTE_FP32_LOSS = True      # loss math done in f32 inside the kernel


# --------------------------------------------------------------------------
# Kernel 1: v_head linear  rewards[b, s] = sum_h hidden[b, s, h] * w[h]
# --------------------------------------------------------------------------
def _vhead_kernel(h_ref, w_ref, o_ref, acc_ref):
    # h_ref: (1, tS, tK) bf16 ; w_ref: (1, tK) bf16
    # o_ref: (1, 1, tS) bf16  ; acc_ref: (1, tS) f32 scratch (K reduction)
    k = pl.program_id(2)

    @pl.when(k == 0)
    def _():
        acc_ref[...] = jnp.zeros_like(acc_ref)

    h = h_ref[0]                                              # (tS, tK)
    w = w_ref[...]                                            # (1, tK)
    # lane-dense orientation: (1, tK) x (tS, tK)^T -> (1, tS)   (MXU, f32 accum)
    acc_ref[...] += lax.dot_general(w, h, (((1,), (1,)), ((), ())),
                                    preferred_element_type=jnp.float32)

    @pl.when(k == pl.num_programs(2) - 1)
    def _():
        o_ref[...] = acc_ref[...][None].astype(o_ref.dtype)   # (1, 1, tS)


def _pick_tile(dim, target, quantum=128):
    """Largest multiple of `quantum` that divides `dim` and is <= target, else full dim."""
    if dim <= target or dim % quantum != 0:
        return dim
    t = (target // quantum) * quantum
    while t >= quantum:
        if dim % t == 0:
            return t
        t -= quantum
    return dim


def _vmem_limit_bytes(tile_s, tile_k, elem_bytes=2):
    # 2 pipeline buffers of the (1, tile_S, tile_K) input block + weight/output/acc
    # buffers + headroom.  Clamp to <=48 MiB so we stay comfortably inside v7x's
    # 64 MiB physical VMEM per TensorCore, and >=32 MiB so v5e's 16 MiB scoped
    # default never truncates the double-buffered blocks.
    block = tile_s * tile_k * elem_bytes
    need = 2 * block + 2 * tile_k * elem_bytes + 2 * tile_s * elem_bytes + tile_s * 4
    return int(min(max(4 * need, 32 * 1024 * 1024), 48 * 1024 * 1024))


def v_head(hidden_states, w, *, tile_s=None, tile_k=None):
    """hidden_states: (B, S, H), w: (1, H) or (H,). Returns rewards (B, S)."""
    B, S, H = hidden_states.shape
    w2 = w.reshape(1, H).astype(hidden_states.dtype)

    ts = tile_s if tile_s is not None else _pick_tile(S, 512)    # seq tile
    tk = tile_k if tile_k is not None else _pick_tile(H, 2048)   # hidden (K) tile
    assert S % ts == 0 and H % tk == 0, "tiles must divide (S, H)"

    grid = (B, S // ts, H // tk)
    out = pl.pallas_call(
        _vhead_kernel,
        out_shape=jax.ShapeDtypeStruct((B, 1, S), hidden_states.dtype),
        grid_spec=pltpu.PrefetchScalarGridSpec(
            num_scalar_prefetch=0,
            grid=grid,
            in_specs=[
                pl.BlockSpec((1, ts, tk), lambda b, s, k: (b, s, k)),
                pl.BlockSpec((1, tk), lambda b, s, k: (0, k)),
            ],
            out_specs=pl.BlockSpec((1, 1, ts), lambda b, s, k: (b, 0, s)),
            scratch_shapes=[pltpu.VMEM((1, ts), jnp.float32)],
        ),
        compiler_params=pltpu.CompilerParams(
            # (B, S-tiles) are parallel (megacore sharding on v7x); K is the reduction.
            dimension_semantics=("parallel", "parallel", "arbitrary"),
            vmem_limit_bytes=_vmem_limit_bytes(ts, tk),
        ),
    )(hidden_states, w2)
    return out.reshape(B, S)


# --------------------------------------------------------------------------
# Kernel 2: pairwise reward loss + chosen/rejected mean (end) scores
# --------------------------------------------------------------------------
def _pairwise_kernel(c_ids_ref, r_ids_ref, c_rew_ref, r_rew_ref,
                     loss_ref, c_score_ref, r_score_ref):
    bs, S = c_ids_ref.shape
    idx = lax.broadcasted_iota(jnp.int32, (bs, S), 1)
    c_ids = c_ids_ref[...]
    r_ids = r_ids_ref[...]
    c_rew = c_rew_ref[...].astype(jnp.float32)   # compute_fp32_loss
    r_rew = r_rew_ref[...].astype(jnp.float32)

    big = jnp.int32(S)
    # first PAD position (== seq_len if no pad), matching num_padding_at_beginning=0
    c_pad_first = jnp.min(jnp.where(c_ids == PAD_ID, idx, big), axis=1, keepdims=True)
    r_pad_first = jnp.min(jnp.where(r_ids == PAD_ID, idx, big), axis=1, keepdims=True)
    # first divergence position between chosen and rejected ids
    div_first = jnp.min(jnp.where(c_ids != r_ids, idx, big), axis=1, keepdims=True)
    no_div = div_first == big

    c_ind = c_pad_first
    r_ind = jnp.where(no_div, c_ind, r_pad_first)
    end_ind = jnp.where(no_div, big, jnp.maximum(c_ind, r_pad_first))
    div_ind = jnp.where(no_div, big - 1, div_first)

    # pairwise logsigmoid loss over [div_ind, end_ind), f32
    x = c_rew - r_rew
    # stable logsigmoid(x) = min(x, 0) - log1p(exp(-|x|))
    ls = jnp.minimum(x, 0.0) - jnp.log1p(jnp.exp(-jnp.abs(x)))
    in_range = (idx >= div_ind) & (idx < end_ind)
    count = jnp.maximum(end_ind - div_ind, 1).astype(jnp.float32)   # divide-by-zero guard
    per_pair = -jnp.sum(jnp.where(in_range, ls, 0.0), axis=1, keepdims=True) / count  # (bs, 1)

    # end scores: reward[c_ind - 1]; reproduce PyTorch's wrap-around ([-1]) when ind == 0
    c_gidx = jnp.where(c_ind == 0, big - 1, c_ind - 1)
    r_gidx = jnp.where(r_ind == 0, big - 1, r_ind - 1)
    c_score = jnp.sum(jnp.where(idx == c_gidx, c_rew, 0.0), axis=1, keepdims=True)  # (bs, 1)
    r_score = jnp.sum(jnp.where(idx == r_gidx, r_rew, 0.0), axis=1, keepdims=True)  # (bs, 1)

    # Sublane->lane transpose of the tiny (bs, 1) column results via a rank-1 MXU dot,
    # so the three outputs are stored as lane-dense (1, bs) rows (no lane-sparse stores).
    ones11 = jnp.ones((1, 1), jnp.float32)
    dnums = (((1,), (1,)), ((), ()))
    loss_ref[...] = lax.dot_general(ones11, per_pair, dnums,
                                    preferred_element_type=jnp.float32)
    c_score_ref[...] = lax.dot_general(ones11, c_score, dnums,
                                       preferred_element_type=jnp.float32
                                       ).astype(c_score_ref.dtype)
    r_score_ref[...] = lax.dot_general(ones11, r_score, dnums,
                                       preferred_element_type=jnp.float32
                                       ).astype(r_score_ref.dtype)


def pairwise_loss(chosen_ids, rejected_ids, chosen_rewards, rejected_rewards):
    bs, _ = chosen_ids.shape
    vmem = pl.BlockSpec(memory_space=pltpu.MemorySpace.VMEM)
    # TODO(synk): for very large bs*S, add a grid over the pair dimension with an
    #             accumulated-loss scratch instead of whole-array VMEM residency.
    per_pair, c_scores, r_scores = pl.pallas_call(
        _pairwise_kernel,
        out_shape=(
            jax.ShapeDtypeStruct((1, bs), jnp.float32),
            jax.ShapeDtypeStruct((1, bs), chosen_rewards.dtype),
            jax.ShapeDtypeStruct((1, bs), rejected_rewards.dtype),
        ),
        in_specs=[vmem, vmem, vmem, vmem],
        out_specs=(vmem, vmem, vmem),
    )(chosen_ids, rejected_ids, chosen_rewards, rejected_rewards)
    loss = jnp.mean(per_pair[0])                 # final 1/bs reduction: trivial scalar glue
    return loss, c_scores[0], r_scores[0]


# --------------------------------------------------------------------------
# RewardModel.forward (glue)
# --------------------------------------------------------------------------
def reward_model_forward(input_ids, hidden_states, v_head_w, *, tile_s=None, tile_k=None):
    rewards = v_head(hidden_states, v_head_w, tile_s=tile_s, tile_k=tile_k)   # (B, S) bf16
    B = input_ids.shape[0]
    bs = B // 2
    loss, chosen_scores, rejected_scores = pairwise_loss(
        input_ids[:bs], input_ids[bs:], rewards[:bs], rewards[bs:])
    return {"loss": loss,
            "chosen_mean_scores": chosen_scores,
            "rejected_mean_scores": rejected_scores,
            "rewards": rewards}


# --------------------------------------------------------------------------
# numpy reference that mirrors the PyTorch per-sample loop (for validation)
# --------------------------------------------------------------------------
def _reference(input_ids, rewards):
    B, S = input_ids.shape
    bs = B // 2
    c_ids, r_ids = input_ids[:bs], input_ids[bs:]
    c_rw, r_rw = rewards[:bs], rewards[bs:]
    loss = 0.0
    c_scores, r_scores = [], []
    for i in range(bs):
        cid, rid = c_ids[i], r_ids[i]
        cr, rr = c_rw[i], r_rw[i]
        c_pads = np.nonzero(cid == PAD_ID)[0]
        c_ind = int(c_pads[NUM_PADDING_AT_BEGINNING]) if len(c_pads) > NUM_PADDING_AT_BEGINNING else S
        div = np.nonzero(cid != rid)[0]
        if len(div) == 0:
            end_ind, divergence_ind, r_ind = S, S - 1, c_ind
        else:
            r_pads = np.nonzero(rid == PAD_ID)[0]
            r_ind = int(r_pads[NUM_PADDING_AT_BEGINNING]) if len(r_pads) > NUM_PADDING_AT_BEGINNING else S
            end_ind, divergence_ind = max(c_ind, r_ind), int(div[0])
        x = cr[divergence_ind:end_ind].astype(np.float32) - rr[divergence_ind:end_ind].astype(np.float32)
        ls = np.minimum(x, 0.0) - np.log1p(np.exp(-np.abs(x)))
        loss += -ls.mean()
        c_scores.append(cr[c_ind - 1])
        r_scores.append(rr[r_ind - 1])
    return loss / bs, np.array(c_scores), np.array(r_scores)


# --------------------------------------------------------------------------
# demo / validation
# --------------------------------------------------------------------------
def _build_inputs(key, bs, S, H, vocab, c_pad_start, r_pad_start):
    B = 2 * bs
    k_ids, k_emb, k_w = jax.random.split(key, 3)

    ids = jax.random.randint(k_ids, (B, S), 1, vocab, dtype=jnp.int32)
    chosen = ids[:bs]
    rejected = ids[bs:]
    rejected = rejected.at[:, :3].set(chosen[:, :3])      # identical prompt prefix
    rejected = rejected.at[:, 3].set(chosen[:, 3] + 1)    # guaranteed divergence at index 3
    chosen = chosen.at[:, c_pad_start:].set(PAD_ID)       # trailing padding
    rejected = rejected.at[:, r_pad_start:].set(PAD_ID)
    input_ids = jnp.concatenate([chosen, rejected], axis=0)

    # Stand-in for the base transformer: deterministic embedding lookup (plain JAX glue).
    emb_table = (jax.random.normal(k_emb, (vocab + 1, H), dtype=jnp.float32) * 0.5).astype(jnp.bfloat16)
    hidden_states = emb_table[input_ids]                  # (B, S, H) bf16

    # v_head = nn.Linear(H, 1, bias=False, dtype=bf16): weight (1, H), U(-1/sqrt(H), 1/sqrt(H)).
    bound = 1.0 / np.sqrt(H)
    v_head_w = jax.random.uniform(k_w, (1, H), minval=-bound, maxval=bound,
                                  dtype=jnp.float32).astype(jnp.bfloat16)
    return input_ids, hidden_states, v_head_w


def _check_case(name, input_ids, hidden_states, v_head_w, tile_s=None, tile_k=None):
    out = reward_model_forward(input_ids, hidden_states, v_head_w,
                               tile_s=tile_s, tile_k=tile_k)
    out = jax.tree_util.tree_map(jax.block_until_ready, out)

    # Validate the v_head kernel against a plain-JAX matmul.
    rewards_ref = (jnp.einsum("bsh,h->bs",
                              hidden_states.astype(jnp.float32),
                              v_head_w[0].astype(jnp.float32))).astype(jnp.bfloat16)
    assert np.allclose(np.asarray(out["rewards"], dtype=np.float32),
                       np.asarray(rewards_ref, dtype=np.float32),
                       atol=2e-2, rtol=2e-2), f"{name}: rewards mismatch"

    # Validate the pairwise-loss kernel against the PyTorch-equivalent per-sample loop.
    ref_loss, ref_c, ref_r = _reference(np.asarray(input_ids),
                                        np.asarray(out["rewards"], dtype=np.float32))
    assert np.allclose(float(out["loss"]), ref_loss, atol=1e-3, rtol=1e-3), f"{name}: loss mismatch"
    assert np.allclose(np.asarray(out["chosen_mean_scores"], dtype=np.float32), ref_c,
                       atol=1e-3), f"{name}: chosen scores mismatch"
    assert np.allclose(np.asarray(out["rejected_mean_scores"], dtype=np.float32), ref_r,
                       atol=1e-3), f"{name}: rejected scores mismatch"


if __name__ == "__main__":
    key = jax.random.PRNGKey(0)
    k_small, k_tiled = jax.random.split(key, 2)

    # Case 1: tiny shapes (fall back to full-dim blocks; single K step).
    input_ids, hidden_states, v_head_w = _build_inputs(
        k_small, bs=2, S=8, H=32, vocab=50, c_pad_start=6, r_pad_start=5)
    _check_case("small", input_ids, hidden_states, v_head_w)

    # Case 2: still small, but exercises the tiled path: seq tiling (tile_S=128)
    # and the K-reduction grid axis with the f32 accumulator (tile_K=128).
    input_ids2, hidden_states2, v_head_w2 = _build_inputs(
        k_tiled, bs=2, S=256, H=256, vocab=50, c_pad_start=200, r_pad_start=180)
    _check_case("tiled", input_ids2, hidden_states2, v_head_w2, tile_s=128, tile_k=128)

    print("KERNEL_OK")
</pallas_src>

<mosaic_0001>
module attributes {stable_mosaic.version = 11 : i64} {
  func.func @_vhead_kernel(%arg0: i32, %arg1: i32, %arg2: i32, %arg3: memref<1x8x32xbf16, #tpu.memory_space<vmem>>, %arg4: memref<1x32xbf16, #tpu.memory_space<vmem>>, %arg5: memref<1x1x8xbf16, #tpu.memory_space<vmem>>, %arg6: memref<1x8xf32, #tpu.memory_space<vmem>>) attributes {dimension_semantics = [#tpu.dimension_semantics<parallel>, #tpu.dimension_semantics<parallel>, #tpu.dimension_semantics<arbitrary>], iteration_bounds = array<i64: 4, 1, 1>, scalar_prefetch = 0 : i64, scratch_operands = 1 : i64, tpu.core_type = #tpu.core_type<tc>, window_params = [{transform_indices = @transform_0, window_bounds = array<i64: 1, 8, 32>}, {transform_indices = @transform_1, window_bounds = array<i64: 1, 32>}, {transform_indices = @transform_2, window_bounds = array<i64: 1, 1, 8>}]} {
    %c0_i32 = arith.constant 0 : i32
    %0 = arith.cmpi eq, %arg2, %c0_i32 : i32
    %1 = arith.extui %0 : i1 to i32
    %c0_i32_0 = arith.constant 0 : i32
    %2 = arith.cmpi ne, %1, %c0_i32_0 : i32
    scf.if %2 {
      %cst_11 = arith.constant 0.000000e+00 : f32
      %13 = vector.broadcast %cst_11 : f32 to vector<1x8xf32>
      %c0_12 = arith.constant 0 : index
      %c0_13 = arith.constant 0 : index
      %14 = vector.load %arg6[%c0_12, %c0_13] : memref<1x8xf32, #tpu.memory_space<vmem>>, vector<1x8xf32>
      tpu.vector_store %arg6[%c0_12, %c0_13], %13 {strides = array<i32>} : memref<1x8xf32, #tpu.memory_space<vmem>>, vector<1x8xf32>,
    } else {
    }
    %c0 = arith.constant 0 : index
    %c0_1 = arith.constant 0 : index
    %c0_2 = arith.constant 0 : index
    %3 = vector.load %arg3[%c0, %c0_1, %c0_2] : memref<1x8x32xbf16, #tpu.memory_space<vmem>>, vector<1x8x32xbf16>
    %4 = vector.shape_cast %3 : vector<1x8x32xbf16> to vector<8x32xbf16>
    %c0_3 = arith.constant 0 : index
    %c0_4 = arith.constant 0 : index
    %5 = vector.load %arg4[%c0_3, %c0_4] : memref<1x32xbf16, #tpu.memory_space<vmem>>, vector<1x32xbf16>
    %c0_5 = arith.constant 0 : index
    %c0_6 = arith.constant 0 : index
    %6 = vector.load %arg6[%c0_5, %c0_6] : memref<1x8xf32, #tpu.memory_space<vmem>>, vector<1x8xf32>
    %cst = arith.constant dense<0.000000e+00> : vector<1x8xf32>
    %7 = tpu.matmul %5, %4, %cst {dimension_numbers = #tpu.dot_dimension_numbers<[1], [1], [0], [0], [0, 0, 1, 0], [], []>} : vector<1x32xbf16>, vector<8x32xbf16>, vector<1x8xf32> -> vector<1x8xf32>
    %8 = arith.addf %6, %7 : vector<1x8xf32>
    %c0_7 = arith.constant 0 : index
    %c0_8 = arith.constant 0 : index
    %9 = vector.load %arg6[%c0_7, %c0_8] : memref<1x8xf32, #tpu.memory_space<vmem>>, vector<1x8xf32>
    tpu.vector_store %arg6[%c0_7, %c0_8], %8 {strides = array<i32>} : memref<1x8xf32, #tpu.memory_space<vmem>>, vector<1x8xf32>,
    %c0_i32_9 = arith.constant 0 : i32
    %10 = arith.cmpi eq, %arg2, %c0_i32_9 : i32
    %11 = arith.extui %10 : i1 to i32
    %c0_i32_10 = arith.constant 0 : i32
    %12 = arith.cmpi ne, %11, %c0_i32_10 : i32
    scf.if %12 {
      %c0_11 = arith.constant 0 : index
      %c0_12 = arith.constant 0 : index
      %13 = vector.load %arg6[%c0_11, %c0_12] : memref<1x8xf32, #tpu.memory_space<vmem>>, vector<1x8xf32>
      %14 = vector.shape_cast %13 : vector<1x8xf32> to vector<1x1x8xf32>
      %15 = arith.truncf %14 : vector<1x1x8xf32> to vector<1x1x8xbf16>
      %c0_13 = arith.constant 0 : index
      %c0_14 = arith.constant 0 : index
      %c0_15 = arith.constant 0 : index
      %16 = vector.load %arg5[%c0_13, %c0_14, %c0_15] : memref<1x1x8xbf16, #tpu.memory_space<vmem>>, vector<1x1x8xbf16>
      tpu.vector_store %arg5[%c0_13, %c0_14, %c0_15], %15 {strides = array<i32>} : memref<1x1x8xbf16, #tpu.memory_space<vmem>>, vector<1x1x8xbf16>,
    } else {
    }
    return
  }
  func.func @transform_0(%arg0: i32, %arg1: i32, %arg2: i32) -> (i32, i32, i32) {
    %c0_i32 = arith.constant 0 : i32
    return %arg0, %arg1, %arg2 : i32, i32, i32
  }
  func.func @transform_1(%arg0: i32, %arg1: i32, %arg2: i32) -> (i32, i32) {
    %c0_i32 = arith.constant 0 : i32
    %c0_i32_0 = arith.constant 0 : i32
    return %c0_i32, %arg2 : i32, i32
  }
  func.func @transform_2(%arg0: i32, %arg1: i32, %arg2: i32) -> (i32, i32, i32) {
    %c0_i32 = arith.constant 0 : i32
    %c0_i32_0 = arith.constant 0 : i32
    return %arg0, %c0_i32, %arg1 : i32, i32, i32
  }
}

</mosaic_0001>

<bundles_post_ra>
// kernel: tpu_custom_call.1
= control target key start
LH: loop header
LB: loop body
LE: loop exit
PB: predicated region body
PF: predicated region fallthrough
CT: control target
= control target key end

     0   :  { %7 = vsyncpa [#allocation4], 0  ;;  %s677_s0 = inlined_call_operand.hbm [shape: bf16[4,8,32], index: 0, kind: input, shape index: {}]   ;;  %s678_s1 = inlined_call_operand.hbm [shape: bf16[1,32], index: 1, kind: input, shape index: {}]   ;;  %s679_s2 = inlined_call_operand.vmem [shape: bf16[4,1,8], index: 2, kind: output, shape index: {}]  }
   0x1   :  { %9 = vsyncpa [#allocation4 + $0x1], 0 }
   0x2   :  { %10 = vsyncpa [#allocation6], 0  ;;  %s563_s9 = smov 0   ;;  %s565_s10 = smov 0  }
   0x3   :  { %s567_s11 = smov 0   ;;  %s569_s12 = smov 0  }
   0x4   :  { %s571_s13 = smov 0   ;;  %s573_s14 = smov 0  }
   0x5 LB: > { %s350_s15 = sadd.s32 4294967295, %s544_s14   ;;  %p59_p0 = scmp.ne.s32.totalorder %s528_s10, %s524_s9  ;;  %s544_s14 = sphi %s573_s14, %s16_s14   ;;  %s540_s13 = sphi %s571_s13, %s688_s13   ;;  %s536_s12 = sphi %s569_s12, %s687_s12   ;;  %s532_s11 = sphi %s567_s11, %s686_s11   ;;  %s528_s10 = sphi %s565_s10, %s685_s10   ;;  %s524_s9 = sphi %s563_s9, %s684_s9  }
   0x6   : > { %p593_p1 = scmp.eq.s32.totalorder %s350_s15, 0  ;;  %p352_p2 = scmp.ge.s32.totalorder %s544_s14, 1 }
   0x7   : > { %p124_p3 = scmp.lt.s32.totalorder %s544_s14, 5  ;;  %s137_s20 = sshll.u32 %s678_s1, 4  ;;  %s138_s20 = int_to_ptr.hbm [resolvable:$true] %s137_s20 }
   0x8   : > { %p601_p4 = por %p593_p1, %p59_p0  ;;  %s546_s22 = smov [#allocation5]  }
   0x9   : > { %p608_p5 = pnand %p352_p2, %p124_p3  ;;  %s139_s23 = sshll.u32 %s546_s22, 4  ;;  %s140_s23 = int_to_ptr.vmem [resolvable:$true] %s139_s23 }
   0xa   : > { %s35_s24 = sadd.s32 1, %s540_s13  ;;  %p53_p9 = scmp.ne.s32.totalorder %s532_s11, %s528_s10 }
   0xb   : > { %p369_p6 = pneg %p608_p5  ;;  %p37_p8 = scmp.ge.s32.totalorder %s35_s24, 4 }
   0xc   : > { %p54_p10 = scmp.eq.s32.totalorder %s544_s14, 0  ;;  %s46_s25 = sadd.s32 1, %s532_s11 }
   0xd   : > { %p370_p7 = pnand %p369_p6, %p593_p1  ;;  %s690_s24 = smov (%p37_p8, %s35_s24), 0 }
   0xe   : > { %p623_p11 = por %p54_p10, %p53_p9  ;;  %s39_s27 = ssub.s32 %s540_s13, %s690_s24 }
   0xf   : > { %372 = dma.hbm_to_vmem [thread:$0]  (!%p370_p7), %s138_s20, 16, %s140_s23, [#allocation6]  }
  0x10   : > { %s150_s28 = sand.u32 1, %s532_s11   ;;  %p44_p12 = scmp.eq.s32.totalorder %s39_s27, 0 }
  0x11   : > { %p378_p13 = scmp.lt.s32.totalorder %s544_s14, 4  ;;  %s355_s29 = sshll.u32 %s150_s28, 2 }
  0x12   : > { %s356_s30 = sshll.u32 %s540_s13, 2  ;;  %s154_s8 = scalar_lea.vmem [#allocation3], %s355_s29 }
  0x13   : > { %s633_s3 = scalar_select %p44_p12, %s532_s11, %s46_s25  }
  0x14   : > { %s160_s6 = scalar_lea.hbm %s677_s0, %s356_s30  ;;  %s164_s9 = sshll.u32 %s154_s8, 4  ;;  %s165_s9 = int_to_ptr.vmem [resolvable:$true] %s164_s9 }
  0x15   : > { %s162_s7 = sshll.u32 %s160_s6, 4  ;;  %p374_p0 = pnand %p378_p13, %p623_p11  ;;  %s163_s7 = int_to_ptr.hbm [resolvable:$true] %s162_s7 }
  0x16   : > { %s151_s15 = scalar_lea.sflag [#allocation4], %s150_s28  ;;  %173 = sbr.rel (%p608_p5) target bundleno = 180 (0xb4), region = 28 }
  0x17   : > { %376 = dma.hbm_to_vmem [thread:$0]  (!%p374_p0), %s163_s7, 64, %s165_s9, %s151_s15  }
  0x18   : > { %s175_s18 = sand.u32 (!%p608_p5), 1, %s528_s10  }
  0x19   : > { %s358_s19 = sshll.u32 (!%p608_p5), %s175_s18, 2  ;;  %s176_s20 = scalar_lea.sflag (!%p608_p5), [#allocation4], %s175_s18 }
  0x1a   : > { %s179_s22 = scalar_lea.vmem (!%p608_p5), [#allocation3], %s358_s19 }
  0x1b   : > { %515 = dma.done.wait (%p601_p4), %s176_s20, 64  }
  0x1c   : > { %517 = vsyncadd (%p601_p4), %s176_s20, 4294967232 }
  0x1d   : > { %519 = dma.done.wait (%p593_p1), [#allocation6], 16  }
  0x1e   : > { %521 = vsyncadd (%p593_p1), [#allocation6], 4294967280  ;;  %vm218_vm0 = vcmask 57344   ;;  %v547_v0 = vmov 0.0   ;;  %vm223_vm1 = vcmask 261120   ;;  %p207_p2 = scmp.lt.s32.totalorder %s536_s12, 3 }
  0x1f   : > { %219 = vst.msk [vmem:[#allocation2] sm:$0x1] %vm218_vm0, %v547_v0  ;;  %v220_v1 = vld [vmem:[%s179_s22] sm:$0xf]  ;;  %v221_v3 = vld [vmem:[#allocation5] sm:$0x1] }
  0x20   : > { %v228_v2 = vsel %vm223_vm1, %v220_v1, 0  ;;  %s692_s12 = smov (!%p207_p2, %s536_s12), 3  ;;  %vm252_vm2 = vsmask.f32 256 }
  0x21   : > { %237 = vmatpush.bf16.xpose.msra.mxu0 %v228_v2  ;;  %s212_s21 = scalar_lea.vmem %s679_s2, %s692_s12  ;;  %vm253_vm3 = vmand %vm218_vm0, %vm252_vm2 }
  0x22   : > { %v254_v9 = vld [vmem:[%s212_s21] sm:$0x1] }
  0x26   : > { %v222_v4 = vld [vmem:[#allocation2] sm:$0x1] }
  0x28   : > { %360 = vmatmul.msk.bf16.vlgmr.msra.gmra.mxu0 %vm223_vm1, %v221_v3 }
  0xa5   : > { %v239_v5 = vpop.f32.mrf.mxu0 }
  0xa6   : > { %v243_v6 = vadd.f32 %v239_v5, %v222_v4 }
  0xa8   : > { %245 = vst.msk [vmem:[#allocation2] sm:$0x1] %vm218_vm0, %v243_v6 }
  0xad   : > { %v241_v7 = vpop.f32.mrf.mxu0 }
  0xaf   : > { %v249_v8 = vld [vmem:[#allocation2] sm:$0x1] }
  0xb0   : > { %v250_v10 = vpack.c.bf16 %v249_v8, %v249_v8 }
  0xb2   : > { %v255_v11 = vsel %vm253_vm3, %v250_v10, %v254_v9 }
  0xb3   : > { %256 = vst [vmem:[%s212_s21] sm:$0x1] %v255_v11 }
  0xb4 PF: > { %s16_s14 = sadd.s32 1, %s544_s14   ;;  %s684_s9 = smov %s528_s10 }
  0xb5   : > { %p13_p1 = scmp.ge.s32.totalorder %s16_s14, 6   ;;  %s685_s10 = smov %s532_s11 }
  0xb6   : > { %s686_s11 = smov %s633_s3  ;;  %s687_s12 = smov %s540_s13 }
  0xb7   : > { %s688_s13 = smov %s690_s24  ;;  %15 = sbr.rel (!%p13_p1) target bundleno = 5 (0x5), region = 81 }
  0xbc   :  { %280 = vsyncpa [#allocation4], 1 }
  0xbd   :  { %282 = vsyncpa [#allocation4 + $0x1], 1 }
  0xbe   :  { %283 = vsyncpa [#allocation6], 1 }

</bundles_post_ra>
